<compile_context>
chip_gen: v5e
topology: v5e:2x2
jax: 0.10.0
libtpu: 0.0.40
codegen_flags: <defaults>
</compile_context>

<pallas_src>
import functools

import jax
import jax.numpy as jnp
from jax import lax
from jax.experimental import pallas as pl
from jax.experimental.pallas import tpu as pltpu

_LANES = 128
_SUBLANES = 8
_SLAB_ROWS = 1024          # fused-path strip size: 512 KiB f32 per slab
_TINY = 1e-30              # clamp for max|x|; PyTorch asserts max|x| > 0


def _round_up(n, m):
    return -(-n // m) * m


def _vmem_capacity_bytes() -> int:
    """Physical VMEM per TensorCore, with a v7x-safe fallback."""
    try:
        return int(pltpu.get_tpu_info().vmem_capacity_bytes)
    except Exception:
        return 64 * 1024 * 1024


# ---------------------------------------------------------------------------
# Fused path: whole waveform resident in VMEM, single kernel, single buffer.
# ---------------------------------------------------------------------------
def _fused_kernel(mul_ref, x_ref, o_ref):
    r = x_ref.shape[0]                      # static rows
    n_full = r // _SLAB_ROWS
    rem = r - n_full * _SLAB_ROWS

    def slab_absmax(v):
        # (k*8, 128) native dtype -> (8, 128) f32 running slab max, VPU only.
        a = jnp.abs(v.astype(jnp.float32))
        k = a.shape[0] // _SUBLANES
        if k > 1:
            a = jnp.max(a.reshape(k, _SUBLANES, _LANES), axis=0)
        return a

    # Strip-mined running abs-max: only one 512 KiB slab temp live at a time,
    # keeping fused peak VMEM ~= in-buffer + out-buffer (~2x the waveform).
    run = jnp.zeros((_SUBLANES, _LANES), jnp.float32)
    if n_full > 0:
        def mbody(i, run):
            start = pl.multiple_of(i * _SLAB_ROWS, _SLAB_ROWS)
            return jnp.maximum(run, slab_absmax(x_ref[pl.ds(start, _SLAB_ROWS), :]))
        run = lax.fori_loop(0, n_full, mbody, run)
    vmax = jnp.max(run)                                     # (8,128) -> scalar (XLU)
    if rem > 0:
        tail = jnp.abs(x_ref[pl.ds(n_full * _SLAB_ROWS, rem), :].astype(jnp.float32))
        vmax = jnp.maximum(vmax, jnp.max(tail))

    scale = mul_ref[0] / jnp.maximum(vmax, _TINY)

    # Strip-mined rescale/write (same slab size).
    if n_full > 0:
        @pl.loop(0, n_full)
        def _(i):
            start = pl.multiple_of(i * _SLAB_ROWS, _SLAB_ROWS)
            v = x_ref[pl.ds(start, _SLAB_ROWS), :].astype(jnp.float32)
            o_ref[pl.ds(start, _SLAB_ROWS), :] = (v * scale).astype(o_ref.dtype)
    if rem > 0:
        st = n_full * _SLAB_ROWS
        v = x_ref[pl.ds(st, rem), :].astype(jnp.float32)
        o_ref[pl.ds(st, rem), :] = (v * scale).astype(o_ref.dtype)


def _augment_fused(x2, mul_param, vmem_limit):
    r, _ = x2.shape
    mul = mul_param.reshape(1).astype(jnp.float32)
    return pl.pallas_call(
        _fused_kernel,
        out_shape=jax.ShapeDtypeStruct((r, _LANES), x2.dtype),
        grid=(1,),
        in_specs=[
            pl.BlockSpec(memory_space=pltpu.SMEM),                 # mul_param
            pl.BlockSpec((r, _LANES), lambda i: (0, 0),
                         pipeline_mode=pl.Buffered(1)),            # waveform
        ],
        out_specs=pl.BlockSpec((r, _LANES), lambda i: (0, 0),
                               pipeline_mode=pl.Buffered(1)),
        compiler_params=pltpu.CompilerParams(
            dimension_semantics=("arbitrary",),
            vmem_limit_bytes=int(vmem_limit)),
    )(mul, x2)


# ---------------------------------------------------------------------------
# Tiled path (large waveforms): parallel partial abs-max + parallel rescale.
# ---------------------------------------------------------------------------
def _absmax_partial_kernel(x_ref, o_ref):
    # Per-block partial max; reduction stays elementwise on the VPU down to
    # one (8,128) slab. The tiny cross-lane finish happens in XLA.
    a = jnp.abs(x_ref[...].astype(jnp.float32))            # (tile_r, 128) f32
    r = a.shape[0]
    o_ref[0] = jnp.max(a.reshape(r // _SUBLANES, _SUBLANES, _LANES), axis=0)


def _rescale_kernel(p_ref, x_ref, o_ref):
    # p_ref (SMEM): [mul_param, vmax]; scale folded once in-kernel.
    scale = p_ref[0] / jnp.maximum(p_ref[1], _TINY)
    o_ref[...] = (x_ref[...].astype(jnp.float32) * scale).astype(o_ref.dtype)


def _choose_tile_r(rows, tile_pref):
    """Largest power-of-two tile <= tile_pref that divides `rows` exactly
    (no padding); otherwise a near-equal split rounded to sublanes."""
    t = tile_pref
    while t >= 1024:
        if rows % t == 0:
            return t
        t //= 2
    if rows <= 2048:                       # small forced-tiled case: 1 block
        return _round_up(rows, _SUBLANES)
    nb = max(2, -(-rows // tile_pref))
    return _round_up(-(-rows // nb), _SUBLANES)


def _augment_tiled(x2, mul_param, tile_r, vmem_limit):
    r, _ = x2.shape                        # caller guarantees r % tile_r == 0
    nb = r // tile_r

    # Pass 1: parallel per-block partial maxima (both TCs participate on v7x).
    # TODO(synk): on single-TC chips the two passes could be merged into one
    # 2-phase "arbitrary" grid call to save two launches; kept split so the
    # block axis shards across v7x's two TensorCores.
    partial = pl.pallas_call(
        _absmax_partial_kernel,
        out_shape=jax.ShapeDtypeStruct((nb, _SUBLANES, _LANES), jnp.float32),
        grid=(nb,),
        in_specs=[pl.BlockSpec((tile_r, _LANES), lambda i: (i, 0))],
        out_specs=pl.BlockSpec((1, _SUBLANES, _LANES), lambda i: (i, 0, 0)),
        compiler_params=pltpu.CompilerParams(
            dimension_semantics=("parallel",),
            vmem_limit_bytes=int(vmem_limit)),
    )(x2)
    vmax = jnp.max(partial)                                 # tiny XLA finish

    params = jnp.stack([mul_param.astype(jnp.float32), vmax])

    # Pass 2: parallel rescale; scale computed in-kernel from SMEM scalars.
    # TODO(synk): add input_output_aliases={1: 0} once callers donate x so the
    # rescale can update the waveform in place (without donation XLA inserts a
    # defensive copy, which is why it is omitted here).
    y2 = pl.pallas_call(
        _rescale_kernel,
        out_shape=jax.ShapeDtypeStruct((r, _LANES), x2.dtype),
        grid=(nb,),
        in_specs=[
            pl.BlockSpec(memory_space=pltpu.SMEM),                  # [mul, vmax]
            pl.BlockSpec((tile_r, _LANES), lambda i: (i, 0)),       # waveform
        ],
        out_specs=pl.BlockSpec((tile_r, _LANES), lambda i: (i, 0)),
        compiler_params=pltpu.CompilerParams(
            dimension_semantics=("parallel",),
            vmem_limit_bytes=int(vmem_limit)),
    )(params, x2)
    return y2


# ---------------------------------------------------------------------------
# Path selection + single pad/reshape around the kernels.
# ---------------------------------------------------------------------------
def _scale_to_peak(x, mul_param, force_tiled=False):
    """x: 1-D floating waveform -> x / max|x| * mul_param (same dtype)."""
    L = x.shape[0]
    elem = jnp.dtype(x.dtype).itemsize
    rows = -(-L // _LANES)
    wave_bytes = rows * _LANES * elem

    cap = _vmem_capacity_bytes()
    is_v7x = cap <= 64 * 1024 * 1024

    if is_v7x:
        # Two TCs with private HBM paths: the megacore-parallel tiled path
        # beats the single-core fused path for anything but tiny waveforms,
        # and keeps pressure off the halved 64 MiB VMEM.
        use_fused = wave_bytes <= 2 * 1024 * 1024
    else:
        # Single TC: fused (2x HBM traffic, one launch) beats the two-pass
        # tiled path (3x traffic) whenever it fits.  With single-buffered
        # specs + strip-mined body the kernel holds ~2x the waveform; budget
        # ~3x against half of VMEM for slack.
        use_fused = 3 * wave_bytes + (4 << 20) <= cap // 2
    use_fused = use_fused and not force_tiled

    if use_fused:
        rows_p = rows
        tile_r = None
    else:
        tile_pref = 8192 if is_v7x else 4096        # 4 MiB / 2 MiB f32 blocks
        tile_r = _choose_tile_r(rows, tile_pref)
        rows_p = _round_up(rows, tile_r)

    # Single pad (lane + tile multiple folded together). Padded zeros are safe
    # for the abs-max; the all-zero case is handled by the _TINY clamp.
    Lp = rows_p * _LANES
    xp = x if Lp == L else jnp.pad(x, (0, Lp - L))
    x2 = xp.reshape(rows_p, _LANES)

    if use_fused:
        y2 = _augment_fused(x2, mul_param, vmem_limit=(3 * cap) // 4)
    else:
        y2 = _augment_tiled(x2, mul_param, tile_r, vmem_limit=cap // 2)

    y = y2.reshape(rows_p * _LANES)
    return y if Lp == L else y[:L]


# ---------------------------------------------------------------------------
# Public wrapper.
# ---------------------------------------------------------------------------
@functools.partial(jax.jit,
                   static_argnames=("volume_mul_params", "volume_aug_rate"))
def volume_augment(x, key,
                   volume_mul_params=(0.25, 0.5, 0.75, 0.95),
                   volume_aug_rate=0.8):
    """x: 1-D waveform. Returns a waveform of the same length (same dtype for
    floating inputs; float32 for integer inputs)."""
    k_gate, k_idx = jax.random.split(key)

    # torch.rand(1) > rate -> skip augmentation; otherwise apply it.
    apply_aug = jax.random.uniform(k_gate) <= volume_aug_rate
    idx = jax.random.randint(k_idx, (), 0, len(volume_mul_params))
    mul_param = jnp.asarray(volume_mul_params, jnp.float32)[idx]

    if not jnp.issubdtype(x.dtype, jnp.floating):
        # TODO(synk): integer waveforms take one up-front cast; floating
        # inputs (f32/bf16/f16) are DMA'd natively and cast in-kernel.
        x = x.astype(jnp.float32)

    # TODO(synk): PyTorch's `assert volume_max > 0` has no traced-value
    # equivalent (would need jax.experimental.checkify); kernels clamp
    # max|x| to 1e-30, so all-zero waveforms pass through as zeros.
    return lax.cond(apply_aug,
                    lambda xv: _scale_to_peak(xv, mul_param),
                    lambda xv: xv, x)


if __name__ == "__main__":
    key = jax.random.PRNGKey(0)
    k_data, k_aug = jax.random.split(key)

    # Small waveform: 2048 samples (16 rows x 128 lanes) -> fused VMEM path.
    L = 2048
    x = jax.random.normal(k_data, (L,), dtype=jnp.float32)
    y = jax.block_until_ready(volume_augment(x, k_aug))

    # Reference with the same RNG decisions.
    k_gate, k_idx = jax.random.split(k_aug)
    apply_aug = jax.random.uniform(k_gate) <= 0.8
    mul_param = jnp.asarray([0.25, 0.5, 0.75, 0.95], jnp.float32)[
        jax.random.randint(k_idx, (), 0, 4)]
    ref = jnp.where(apply_aug, x / jnp.max(jnp.abs(x)) * mul_param, x)
    assert jnp.allclose(y, ref, atol=1e-6, rtol=1e-5), "fused path mismatch"

    # Native-dtype (bf16) input: DMA'd as bf16, computed in f32 in-kernel.
    x_bf = x.astype(jnp.bfloat16)
    y_bf = jax.block_until_ready(volume_augment(x_bf, k_aug))
    assert y_bf.dtype == jnp.bfloat16
    ref_bf = jnp.where(
        apply_aug,
        x_bf.astype(jnp.float32) / jnp.max(jnp.abs(x_bf.astype(jnp.float32)))
        * mul_param,
        x_bf.astype(jnp.float32))
    assert jnp.allclose(y_bf.astype(jnp.float32), ref_bf, atol=2e-2, rtol=2e-2), \
        "bf16 path mismatch"

    # Exercise the tiled two-pass path (forced) at small scale, with a ragged
    # length so the single wrapper pad + final slice are also covered.
    L2 = 24 * 128 + 37
    x_big = jax.random.normal(jax.random.PRNGKey(1), (L2,), jnp.float32)
    tiled_fn = jax.jit(functools.partial(_scale_to_peak, force_tiled=True))
    y_t = jax.block_until_ready(tiled_fn(x_big, jnp.float32(0.5)))
    ref_t = x_big / jnp.max(jnp.abs(x_big)) * 0.5
    assert jnp.allclose(y_t, ref_t, atol=1e-6, rtol=1e-5), "tiled path mismatch"

    print("KERNEL_OK")
</pallas_src>

<mosaic_0001>
module attributes {stable_mosaic.version = 11 : i64} {
  func.func @_fused_kernel(%arg0: i32, %arg1: memref<1xf32, #tpu.memory_space<smem>>, %arg2: memref<16x128xf32, #tpu.memory_space<vmem>>, %arg3: memref<16x128xf32, #tpu.memory_space<vmem>>) attributes {dimension_semantics = [#tpu.dimension_semantics<arbitrary>], iteration_bounds = array<i64: 1>, scalar_prefetch = 0 : i64, scratch_operands = 0 : i64, tpu.core_type = #tpu.core_type<tc>, window_params = [{transform_indices = @transform_0, window_bounds = array<i64: 1>}, {pipeline_mode = #tpu.pipeline_mode<synchronous>, transform_indices = @transform_1, window_bounds = array<i64: 16, 128>}, {pipeline_mode = #tpu.pipeline_mode<synchronous>, transform_indices = @transform_2, window_bounds = array<i64: 16, 128>}]} {
    %cst = arith.constant 0.000000e+00 : f32
    %0 = vector.broadcast %cst : f32 to vector<8x128xf32>
    %1 = vector.shape_cast %0 : vector<8x128xf32> to vector<1x8x128xf32>
    %cst_0 = arith.constant dense<0xFF800000> : vector<1xf32>
    %2 = vector.multi_reduction <maximumf>, %1, %cst_0 [1, 2] : vector<1x8x128xf32> to vector<1xf32>
    %3 = vector.shape_cast %2 : vector<1xf32> to vector<1x1x1xf32>
    %4 = vector.extract %3[0, 0, 0] : f32 from vector<1x1x1xf32>
    %c0 = arith.constant 0 : index
    %c0_1 = arith.constant 0 : index
    %5 = vector.load %arg2[%c0, %c0_1] : memref<16x128xf32, #tpu.memory_space<vmem>>, vector<16x128xf32>
    %6 = math.absf %5 : vector<16x128xf32>
    %7 = vector.shape_cast %6 : vector<16x128xf32> to vector<1x16x128xf32>
    %cst_2 = arith.constant dense<0xFF800000> : vector<1xf32>
    %8 = vector.multi_reduction <maximumf>, %7, %cst_2 [1, 2] : vector<1x16x128xf32> to vector<1xf32>
    %9 = vector.shape_cast %8 : vector<1xf32> to vector<1x1x1xf32>
    %10 = vector.extract %9[0, 0, 0] : f32 from vector<1x1x1xf32>
    %11 = arith.maximumf %4, %10 : f32
    %c0_3 = arith.constant 0 : index
    %12 = memref.load %arg1[%c0_3] : memref<1xf32, #tpu.memory_space<smem>>
    %cst_4 = arith.constant 1.000000e-30 : f32
    %13 = arith.maximumf %11, %cst_4 : f32
    %14 = arith.divf %12, %13 : f32
    %c0_5 = arith.constant 0 : index
    %c0_6 = arith.constant 0 : index
    %15 = vector.load %arg2[%c0_5, %c0_6] : memref<16x128xf32, #tpu.memory_space<vmem>>, vector<16x128xf32>
    %16 = vector.broadcast %14 : f32 to vector<16x128xf32>
    %17 = arith.mulf %15, %16 : vector<16x128xf32>
    %c0_7 = arith.constant 0 : index
    %c0_8 = arith.constant 0 : index
    %18 = vector.load %arg3[%c0_7, %c0_8] : memref<16x128xf32, #tpu.memory_space<vmem>>, vector<16x128xf32>
    tpu.vector_store %arg3[%c0_7, %c0_8], %17 {strides = array<i32>} : memref<16x128xf32, #tpu.memory_space<vmem>>, vector<16x128xf32>,
    return
  }
  func.func @transform_0(%arg0: i32) -> i32 {
    %c0_i32 = arith.constant 0 : i32
    %c0_i32_0 = arith.constant 0 : i32
    return %c0_i32 : i32
  }
  func.func @transform_1(%arg0: i32) -> (i32, i32) {
    %c0_i32 = arith.constant 0 : i32
    %c0_i32_0 = arith.constant 0 : i32
    %c0_i32_1 = arith.constant 0 : i32
    return %c0_i32, %c0_i32_0 : i32, i32
  }
  func.func @transform_2(%arg0: i32) -> (i32, i32) {
    %c0_i32 = arith.constant 0 : i32
    %c0_i32_0 = arith.constant 0 : i32
    %c0_i32_1 = arith.constant 0 : i32
    return %c0_i32, %c0_i32_0 : i32, i32
  }
}

</mosaic_0001>

<bundles_post_ra>
// kernel: branch_1_fun.1
= control target key start
LH: loop header
LB: loop body
LE: loop exit
PB: predicated region body
PF: predicated region fallthrough
CT: control target
= control target key end

     0   :  { %s139_s0 = inlined_call_operand.<no memory space> [shape: f32[1], index: 0, kind: input, shape index: {}]   ;;  %s140_s1 = inlined_call_operand.vmem [shape: f32[16,128], index: 1, kind: input, shape index: {}]   ;;  %s141_s2 = inlined_call_operand.hbm [shape: f32[16,128], index: 2, kind: output, shape index: {}]  }
   0x1   :  { %v13_v0 = vld [vmem:[%s140_s1] sm:$0xff]  ;;  %v14_v1 = vld [vmem:[%s140_s1 + $0x8] sm:$0xff] }
   0x2   :  { %8 = vsyncpa [#allocation4], 0  ;;  %v15_v2 = vand.u32 2147483647, %v13_v0  ;;  %v16_v3 = vand.u32 2147483647, %v14_v1 }
   0x3   :  { %s107_s14 = smov 0.0   ;;  %s108_s16 = smov 1e-30  }
   0x4   :  { %v17_v4 = vmax.f32 %v15_v2, %v16_v3  ;;  %s109_s18 = smov [#allocation3]   ;;  %s58_s25 = sshll.u32 %s141_s2, 4  ;;  %s59_s25 = int_to_ptr.hbm [resolvable:$true] %s58_s25 }
   0x5   :  { %s56_s19 = sshll.u32 %s109_s18, 4  ;;  %s110_s26 = smov 128   ;;  %s57_s19 = int_to_ptr.vmem [resolvable:$true] %s56_s19 }
   0x6   :  { %18 = vmax.xlane.f32.xlu0 %v17_v4  ;;  %s111_s27 = smov 8  }
  0x79   :  { %v19_v5 = vpop.xlane.xlu0 %18 }
  0x7a   :  { %v20_v6 = vrot.slane %v19_v5, 4 }
  0x7c   :  { %v21_v7 = vmax.f32 %v19_v5, %v20_v6 }
  0x7e   :  { %v22_v8 = vrot.slane %v21_v7, 2 }
  0x80   :  { %v23_v9 = vmax.f32 %v21_v7, %v22_v8 }
  0x82   :  { %v24_v10 = vrot.slane %v23_v9, 1 }
  0x84   :  { %v25_v11 = vmax.f32 %v23_v9, %v24_v10 }
  0x86   :  { %70 = vpush %v25_v11 }
  0xb7   :  { %s71_s13 = spop %70 }
  0xb8   :  { %s27_s15 = smax.f32 %s107_s14, %s71_s13 }
  0xb9   :  { %s29_s17 = smax.f32 %s108_s16, %s27_s15 }
  0xba   :  { %v30_v12 = vstv %s29_s17 }
  0xbb   :  { %79 = vrcp.f32 %v30_v12  ;;  %v42_v16 = vand.u32 2147483648, %v30_v12  ;;  %v40_v18 = vand.u32 2147483647, %v30_v12  ;;  %vm36_vm1 = vweird.f32 %v30_v12 }
  0xbd   :  { %v43_v20 = vor.u32 1.1754944e-38, %v42_v16  ;;  %vm41_vm3 = vcmp.eq.f32.partialorder %v40_v18, 8.507059e+37 }
  0xc1   :  { %v80_v13 = vpop.eup %79 }
  0xc2   :  { %v32_v14 = vmul.f32 %v80_v13, %v30_v12  ;;  %vm37_vm0 = vweird.f32 %v80_v13 }
  0xc3   :  { %vm38_vm2 = vmor %vm36_vm1, %vm37_vm0 }
  0xc4   :  { %v33_v15 = vsub.f32 1.0, %v32_v14 }
  0xc6   :  { %v34_v17 = vmul.f32 %v80_v13, %v33_v15 }
  0xc8   :  { %v35_v19 = vadd.f32 %v80_v13, %v34_v17 }
  0xca   :  { %v39_v21 = vsel %vm38_vm2, %v80_v13, %v35_v19 }
  0xcb   :  { %v44_v22 = vsel %vm41_vm3, %v43_v20, %v39_v21 }
  0xcc   :  { %72 = vpush %v44_v22 }
  0xfd   :  { %s73_s1 = spop %72 }
  0xfe   :  { %s46_s22 = smul.f32 %s73_s1, %s139_s0 }
 0x100   :  { %v47_v23 = vstv %s46_s22 }
 0x101   :  { %v48_v24 = vmul.f32 %v47_v23, %v13_v0  ;;  %v49_v25 = vmul.f32 %v47_v23, %v14_v1 }
 0x103   :  { %50 = vst [vmem:[#allocation3] sm:$0xff] %v48_v24 }
 0x104   :  { %51 = vst [vmem:[#allocation3 + $0x8] sm:$0xff] %v49_v25 }
 0x105   :  { %64 = dma.vmem_to_hbm [thread:$0]  %s57_s19, 256, %s59_s25, [#allocation4], %s110_s26, %s110_s26, %s111_s27  }
 0x106   :  { %105 = dma.done.wait [#allocation4], 256  }
 0x107   :  { %106 = vsyncadd [#allocation4], 4294967040 }
 0x108   :  { %69 = vsyncpa [#allocation4], 1 }

</bundles_post_ra>
